<compile_context>
chip_gen: v5e
topology: v5e:2x2
jax: 0.10.0
libtpu: 0.0.40
codegen_flags: <defaults>
</compile_context>

<pallas_src>
import functools

import jax
import jax.numpy as jnp
from jax.experimental import pallas as pl
from jax.experimental.pallas import tpu as pltpu

_LANE = 128      # vreg lane width
_SUBLANE = 8     # f32 sublane count
_H1, _H2, _H3 = 256, 128, 64          # logical hidden widths of MLP3
_H3_PAD = 128                          # 64 -> 128 lanes (zero-padded, exact)


def _round_up(n, m):
    return ((n + m - 1) // m) * m


# --------------------------------------------------------------------------- #
# Hardware-aware configuration helpers (computed once, outside any jit trace). #
# --------------------------------------------------------------------------- #
@functools.lru_cache(maxsize=None)
def _vmem_budgets():
    """Generation-aware VMEM budgets: ~50% of physical VMEM for the per-step
    tile footprint, ~75% as the scoped-VMEM limit handed to Mosaic.  Falls back
    to v7x-safe 32 MiB / 48 MiB when the query is unavailable."""
    cap = None
    try:
        info = pltpu.get_tpu_info()
        cap = int(getattr(info, "vmem_capacity_bytes", 0)) or None
    except Exception:
        cap = None
    if cap is None:
        return 32 * 1024 * 1024, 48 * 1024 * 1024
    return int(cap * 0.5), int(cap * 0.75)


@functools.lru_cache(maxsize=None)
def _const_pipeline_mode_supported():
    """Probe (once) whether pl.Buffered(buffer_count=1) on a constant-index
    BlockSpec of a top-level pallas_call lowers, compiles and runs correctly on
    this JAX/Mosaic build.  Used to drop the useless second VMEM buffer for the
    resident weights; falls back to default double-buffering otherwise."""
    if not hasattr(pl, "Buffered"):
        return False
    try:
        def _probe_kernel(a_ref, w_ref, o_ref):
            o_ref[...] = a_ref[...] + w_ref[...]

        fn = pl.pallas_call(
            _probe_kernel,
            out_shape=jax.ShapeDtypeStruct((16, 128), jnp.float32),
            grid=(2,),
            in_specs=[
                pl.BlockSpec((8, 128), lambda i: (i, 0)),
                pl.BlockSpec((8, 128), lambda i: (0, 0),
                             pipeline_mode=pl.Buffered(buffer_count=1)),
            ],
            out_specs=pl.BlockSpec((8, 128), lambda i: (i, 0)),
        )
        a = jnp.ones((16, 128), jnp.float32)
        w = jnp.ones((8, 128), jnp.float32)
        res = jax.block_until_ready(fn(a, w))
        return bool(jnp.all(res == 2.0))
    except Exception:
        return False


# --------------------------------------------------------------------------- #
# Kernel                                                                       #
# --------------------------------------------------------------------------- #
def _mlp3_kernel(x_ref, w1_ref, b1_ref, w2_ref, b2_ref, w3_ref, b3_ref,
                 w4_ref, b4_ref, o_ref):
    """One batch tile of the fused 4-layer MLP.

    Matmuls take bf16 operands (MXU fast path) with f32 accumulation; bias add
    and ReLU run in f32 on the VPU.  The input may arrive as f32 (no wrapper
    pad pass) -- the bf16 cast happens here, essentially for free under the
    MXU/DMA-bound regime.
    """
    x = x_ref[...].astype(jnp.bfloat16)

    h = jnp.dot(x, w1_ref[...], preferred_element_type=jnp.float32)
    h = jnp.maximum(h + b1_ref[...], 0.0).astype(jnp.bfloat16)

    h = jnp.dot(h, w2_ref[...], preferred_element_type=jnp.float32)
    h = jnp.maximum(h + b2_ref[...], 0.0).astype(jnp.bfloat16)

    h = jnp.dot(h, w3_ref[...], preferred_element_type=jnp.float32)
    h = jnp.maximum(h + b3_ref[...], 0.0).astype(jnp.bfloat16)

    out = jnp.dot(h, w4_ref[...], preferred_element_type=jnp.float32) + b4_ref[...]
    o_ref[...] = out.astype(o_ref.dtype)


# --------------------------------------------------------------------------- #
# Parameter init / preparation                                                 #
# --------------------------------------------------------------------------- #
def init_mlp3_params(key, in_dim, out_dim, dtype=jnp.float32):
    """Mirrors nn.Linear's default U(-1/sqrt(fan_in), +1/sqrt(fan_in)) init.

    Weights are stored (in_features, out_features) (transposed vs. PyTorch);
    biases are (1, out_features).
    """
    dims = [(in_dim, _H1), (_H1, _H2), (_H2, _H3), (_H3, out_dim)]
    params = {}
    for idx, (fan_in, fan_out) in enumerate(dims, start=1):
        key, kw, kb = jax.random.split(key, 3)
        bound = 1.0 / float(fan_in) ** 0.5
        params[f"w{idx}"] = jax.random.uniform(
            kw, (fan_in, fan_out), dtype, minval=-bound, maxval=bound)
        params[f"b{idx}"] = jax.random.uniform(
            kb, (1, fan_out), dtype, minval=-bound, maxval=bound)
    return params


def prepare_mlp3_params(params):
    """Pad feature dims to 128-lane multiples and cast weights to bf16.

    Zero padding is exact: padded input/hidden columns are 0 (ReLU(0)=0) and
    the corresponding zero weight rows contribute nothing to the next matmul.
    Biases stay f32 (bias add / ReLU run in f32).
    """
    def pad2(a, rows, cols):
        return jnp.pad(a, ((0, rows - a.shape[0]), (0, cols - a.shape[1])))

    in_dim = params["w1"].shape[0]
    out_dim = params["w4"].shape[1]
    in_p = _round_up(in_dim, _LANE)
    out_p = _round_up(out_dim, _LANE)

    return {
        "w1": pad2(params["w1"], in_p, _H1).astype(jnp.bfloat16),
        "b1": params["b1"].astype(jnp.float32),
        "w2": params["w2"].astype(jnp.bfloat16),
        "b2": params["b2"].astype(jnp.float32),
        "w3": pad2(params["w3"], _H2, _H3_PAD).astype(jnp.bfloat16),
        "b3": pad2(params["b3"], 1, _H3_PAD).astype(jnp.float32),
        "w4": pad2(params["w4"], _H3_PAD, out_p).astype(jnp.bfloat16),
        "b4": pad2(params["b4"], 1, out_p).astype(jnp.float32),
    }


# --------------------------------------------------------------------------- #
# Forward                                                                      #
# --------------------------------------------------------------------------- #
@functools.partial(
    jax.jit,
    static_argnames=("out_dim", "batch_tile", "b_pad", "out_store_dtype",
                     "single_buf_weights", "vmem_limit_bytes"))
def _mlp3_impl(x, w1, b1, w2, b2, w3, b3, w4, b4, *, out_dim, batch_tile,
               b_pad, out_store_dtype, single_buf_weights, vmem_limit_bytes):
    B, in_dim = x.shape
    in_p = w1.shape[0]
    out_p = w4.shape[1]

    # Skip the wrapper cast/pad pass over x whenever no padding is required:
    # the f32 input is streamed straight into the kernel and cast to bf16 on
    # the VPU (4 B/elem of x HBM traffic instead of 8).  When padding is
    # unavoidable, do the bf16 cast inside the same pad pass.
    if (in_dim != in_p) or (b_pad != B):
        x_in = jnp.pad(x.astype(jnp.bfloat16),
                       ((0, b_pad - B), (0, in_p - in_dim)))
    else:
        x_in = x

    x_spec = pl.BlockSpec((batch_tile, in_p), lambda i: (i, 0))
    out_spec = pl.BlockSpec((batch_tile, out_p), lambda i: (i, 0))

    # Weights/biases are presented whole with a constant index_map, so they are
    # DMA'd into VMEM once and reused by every grid step.  When supported, drop
    # their (useless) second pipeline buffer to save VMEM (matters for large
    # in_dim on v7x's 64 MiB VMEM).
    if single_buf_weights:
        def const_spec(arr):
            return pl.BlockSpec(arr.shape, lambda i: (0, 0),
                                pipeline_mode=pl.Buffered(buffer_count=1))
    else:
        def const_spec(arr):
            return pl.BlockSpec(arr.shape, lambda i: (0, 0))

    in_specs = [
        x_spec,
        const_spec(w1), const_spec(b1),
        const_spec(w2), const_spec(b2),
        const_spec(w3), const_spec(b3),
        const_spec(w4), const_spec(b4),
    ]

    weight_elems = in_p * _H1 + _H1 * _H2 + _H2 * _H3_PAD + _H3_PAD * out_p
    bias_elems = _H1 + _H2 + _H3_PAD + out_p
    out_itemsize = jnp.dtype(out_store_dtype).itemsize
    cost = pl.CostEstimate(
        flops=2 * b_pad * weight_elems,
        transcendentals=0,
        bytes_accessed=(b_pad * in_p * x_in.dtype.itemsize
                        + b_pad * out_p * out_itemsize
                        + weight_elems * 2 + bias_elems * 4),
    )

    grid = (b_pad // batch_tile,)

    out_padded = pl.pallas_call(
        _mlp3_kernel,
        out_shape=jax.ShapeDtypeStruct((b_pad, out_p), out_store_dtype),
        grid_spec=pltpu.PrefetchScalarGridSpec(
            num_scalar_prefetch=0,
            grid=grid,
            in_specs=in_specs,
            out_specs=out_spec,
        ),
        compiler_params=pltpu.CompilerParams(
            dimension_semantics=("parallel",),
            vmem_limit_bytes=vmem_limit_bytes,
        ),
        cost_estimate=cost,
    )(x_in, w1, b1, w2, b2, w3, b3, w4, b4)

    return out_padded[:B, :out_dim].astype(x.dtype)


def mlp3_forward(x, prepared, out_dim, *, batch_tile=None):
    """x: (B, in_dim). prepared: output of prepare_mlp3_params. Returns (B, out_dim)."""
    B, _ = x.shape
    in_p = prepared["w1"].shape[0]
    out_p = prepared["w4"].shape[1]

    single_buf_w = _const_pipeline_mode_supported()
    tile_budget, vmem_limit = _vmem_budgets()

    # --- batch tile selection -------------------------------------------------
    # Large tiles (>=512 rows) push a mem-bound kernel toward the HBM roofline,
    # but for large B cap the tile at ~B/4 so the "parallel" grid keeps >= 4
    # steps (>= 2 per TensorCore on v7x) and input/output DMAs stay hidden.
    B8 = _round_up(B, _SUBLANE)
    user_tile = batch_tile is not None
    if not user_tile:
        batch_tile = min(B8, max(512, _round_up(B8 // 4, _SUBLANE)))
    batch_tile = max(_SUBLANE, _round_up(int(batch_tile), _SUBLANE))

    def vmem_need(bt):
        bf16, f32 = 2, 4
        w_buf = 1 if single_buf_w else 2
        x_tiles = 2 * bt * in_p * f32            # double-buffered input tile (f32 worst case)
        o_tiles = 2 * bt * out_p * f32           # double-buffered output tile (f32 worst case)
        w_bytes = w_buf * ((in_p * _H1 + _H1 * _H2 + _H2 * _H3_PAD + _H3_PAD * out_p) * bf16
                           + (_H1 + _H2 + _H3_PAD + out_p) * f32)
        inter = bt * (_H1 * (f32 + bf16) + _H2 * (f32 + bf16))   # live f32 acc + bf16 act
        return x_tiles + o_tiles + w_bytes + inter

    while vmem_need(batch_tile) > tile_budget and batch_tile > _SUBLANE:
        batch_tile = max(_SUBLANE, _round_up(batch_tile // 2, _SUBLANE))

    if not user_tile:
        # Re-balance into equal chunks with the same step count so ragged
        # batches waste as few padded rows as possible.
        n_steps = -(-B // batch_tile)
        batch_tile = max(_SUBLANE, _round_up(-(-B // n_steps), _SUBLANE))

    b_pad = _round_up(B, batch_tile)

    # Store bf16 from the kernel when a slice/fixup pass exists anyway (halves
    # the padded writeback); otherwise store x.dtype directly.
    needs_slice = (out_p != out_dim) or (b_pad != B)
    out_store_dtype = jnp.dtype(jnp.bfloat16) if needs_slice else jnp.dtype(x.dtype)

    return _mlp3_impl(
        x, prepared["w1"], prepared["b1"], prepared["w2"], prepared["b2"],
        prepared["w3"], prepared["b3"], prepared["w4"], prepared["b4"],
        out_dim=int(out_dim), batch_tile=int(batch_tile), b_pad=int(b_pad),
        out_store_dtype=out_store_dtype,
        single_buf_weights=bool(single_buf_w),
        vmem_limit_bytes=int(vmem_limit))


def _reference_forward(x, params):
    h = x
    for i in (1, 2, 3):
        h = jnp.maximum(h @ params[f"w{i}"] + params[f"b{i}"], 0.0)
    return h @ params["w4"] + params["b4"]


if __name__ == "__main__":
    key = jax.random.PRNGKey(0)
    k_x1, k_p1, k_x2, k_p2 = jax.random.split(key, 4)

    # Small shape matching the module spec (single grid step, padded features).
    B, in_dim, out_dim = 8, 32, 16
    x = jax.random.normal(k_x1, (B, in_dim), dtype=jnp.float32)
    params = init_mlp3_params(k_p1, in_dim, out_dim)
    out = jax.block_until_ready(
        mlp3_forward(x, prepare_mlp3_params(params), out_dim))
    ref = _reference_forward(x, params)
    assert out.shape == (B, out_dim) and out.dtype == x.dtype
    # bf16 matmul operands / activations (f32 accumulation) => relaxed tolerance.
    assert jnp.allclose(out, ref, atol=5e-2, rtol=5e-2), \
        f"max abs err {float(jnp.max(jnp.abs(out - ref)))}"

    # Ragged batch exercising a multi-step grid and batch + feature padding.
    B2, in2, out2 = 1030, 96, 24
    x2 = jax.random.normal(k_x2, (B2, in2), dtype=jnp.float32)
    params2 = init_mlp3_params(k_p2, in2, out2)
    out2_arr = jax.block_until_ready(
        mlp3_forward(x2, prepare_mlp3_params(params2), out2))
    ref2 = _reference_forward(x2, params2)
    assert out2_arr.shape == (B2, out2) and out2_arr.dtype == x2.dtype
    assert jnp.allclose(out2_arr, ref2, atol=5e-2, rtol=5e-2), \
        f"max abs err {float(jnp.max(jnp.abs(out2_arr - ref2)))}"

    print("KERNEL_OK")
</pallas_src>

<mosaic_0001>
module attributes {stable_mosaic.version = 11 : i64} {
  func.func @_probe_kernel(%arg0: i32, %arg1: memref<8x128xf32, #tpu.memory_space<vmem>>, %arg2: memref<8x128xf32, #tpu.memory_space<vmem>>, %arg3: memref<8x128xf32, #tpu.memory_space<vmem>>) attributes {dimension_semantics = [#tpu.dimension_semantics<arbitrary>], iteration_bounds = array<i64: 2>, scalar_prefetch = 0 : i64, scratch_operands = 0 : i64, tpu.core_type = #tpu.core_type<tc>, window_params = [{transform_indices = @transform_0, window_bounds = array<i64: 8, 128>}, {pipeline_mode = #tpu.pipeline_mode<synchronous>, transform_indices = @transform_1, window_bounds = array<i64: 8, 128>}, {transform_indices = @transform_2, window_bounds = array<i64: 8, 128>}]} {
    %c0 = arith.constant 0 : index
    %c0_0 = arith.constant 0 : index
    %0 = vector.load %arg1[%c0, %c0_0] : memref<8x128xf32, #tpu.memory_space<vmem>>, vector<8x128xf32>
    %c0_1 = arith.constant 0 : index
    %c0_2 = arith.constant 0 : index
    %1 = vector.load %arg2[%c0_1, %c0_2] : memref<8x128xf32, #tpu.memory_space<vmem>>, vector<8x128xf32>
    %2 = arith.addf %0, %1 : vector<8x128xf32>
    %c0_3 = arith.constant 0 : index
    %c0_4 = arith.constant 0 : index
    %3 = vector.load %arg3[%c0_3, %c0_4] : memref<8x128xf32, #tpu.memory_space<vmem>>, vector<8x128xf32>
    tpu.vector_store %arg3[%c0_3, %c0_4], %2 {strides = array<i32>} : memref<8x128xf32, #tpu.memory_space<vmem>>, vector<8x128xf32>,
    return
  }
  func.func @transform_0(%arg0: i32) -> (i32, i32) {
    %c0_i32 = arith.constant 0 : i32
    %c0_i32_0 = arith.constant 0 : i32
    return %arg0, %c0_i32 : i32, i32
  }
  func.func @transform_1(%arg0: i32) -> (i32, i32) {
    %c0_i32 = arith.constant 0 : i32
    %c0_i32_0 = arith.constant 0 : i32
    %c0_i32_1 = arith.constant 0 : i32
    return %c0_i32, %c0_i32_0 : i32, i32
  }
  func.func @transform_2(%arg0: i32) -> (i32, i32) {
    %c0_i32 = arith.constant 0 : i32
    %c0_i32_0 = arith.constant 0 : i32
    return %arg0, %c0_i32 : i32, i32
  }
}

module attributes {stable_mosaic.version = 11 : i64} {
  func.func @_mlp3_kernel(%arg0: i32, %arg1: memref<8x128xbf16, #tpu.memory_space<vmem>>, %arg2: memref<128x256xbf16, #tpu.memory_space<vmem>>, %arg3: memref<1x256xf32, #tpu.memory_space<vmem>>, %arg4: memref<256x128xbf16, #tpu.memory_space<vmem>>, %arg5: memref<1x128xf32, #tpu.memory_space<vmem>>, %arg6: memref<128x128xbf16, #tpu.memory_space<vmem>>, %arg7: memref<1x128xf32, #tpu.memory_space<vmem>>, %arg8: memref<128x128xbf16, #tpu.memory_space<vmem>>, %arg9: memref<1x128xf32, #tpu.memory_space<vmem>>, %arg10: memref<8x128xbf16, #tpu.memory_space<vmem>>) attributes {dimension_semantics = [#tpu.dimension_semantics<parallel>], iteration_bounds = array<i64: 1>, scalar_prefetch = 0 : i64, scratch_operands = 0 : i64, tpu.core_type = #tpu.core_type<tc>, window_params = [{transform_indices = @transform_0, window_bounds = array<i64: 8, 128>}, {pipeline_mode = #tpu.pipeline_mode<synchronous>, transform_indices = @transform_1, window_bounds = array<i64: 128, 256>}, {pipeline_mode = #tpu.pipeline_mode<synchronous>, transform_indices = @transform_2, window_bounds = array<i64: 1, 256>}, {pipeline_mode = #tpu.pipeline_mode<synchronous>, transform_indices = @transform_3, window_bounds = array<i64: 256, 128>}, {pipeline_mode = #tpu.pipeline_mode<synchronous>, transform_indices = @transform_4, window_bounds = array<i64: 1, 128>}, {pipeline_mode = #tpu.pipeline_mode<synchronous>, transform_indices = @transform_5, window_bounds = array<i64: 128, 128>}, {pipeline_mode = #tpu.pipeline_mode<synchronous>, transform_indices = @transform_6, window_bounds = array<i64: 1, 128>}, {pipeline_mode = #tpu.pipeline_mode<synchronous>, transform_indices = @transform_7, window_bounds = array<i64: 128, 128>}, {pipeline_mode = #tpu.pipeline_mode<synchronous>, transform_indices = @transform_8, window_bounds = array<i64: 1, 128>}, {transform_indices = @transform_9, window_bounds = array<i64: 8, 128>}]} {
    %c0 = arith.constant 0 : index
    %c0_0 = arith.constant 0 : index
    %0 = vector.load %arg1[%c0, %c0_0] : memref<8x128xbf16, #tpu.memory_space<vmem>>, vector<8x128xbf16>
    %c0_1 = arith.constant 0 : index
    %c0_2 = arith.constant 0 : index
    %1 = vector.load %arg2[%c0_1, %c0_2] : memref<128x256xbf16, #tpu.memory_space<vmem>>, vector<128x256xbf16>
    %cst = arith.constant dense<0.000000e+00> : vector<8x256xf32>
    %2 = tpu.matmul %0, %1, %cst {dimension_numbers = #tpu.dot_dimension_numbers<[1], [0], [0], [1], [0, 0, 1, 1], [], []>} : vector<8x128xbf16>, vector<128x256xbf16>, vector<8x256xf32> -> vector<8x256xf32>
    %c0_3 = arith.constant 0 : index
    %c0_4 = arith.constant 0 : index
    %3 = vector.load %arg3[%c0_3, %c0_4] : memref<1x256xf32, #tpu.memory_space<vmem>>, vector<1x256xf32>
    %4 = vector.broadcast %3 : vector<1x256xf32> to vector<8x256xf32>
    %5 = arith.addf %2, %4 : vector<8x256xf32>
    %cst_5 = arith.constant 0.000000e+00 : f32
    %6 = vector.broadcast %cst_5 : f32 to vector<8x256xf32>
    %7 = arith.maximumf %5, %6 : vector<8x256xf32>
    %8 = arith.truncf %7 : vector<8x256xf32> to vector<8x256xbf16>
    %c0_6 = arith.constant 0 : index
    %c0_7 = arith.constant 0 : index
    %9 = vector.load %arg4[%c0_6, %c0_7] : memref<256x128xbf16, #tpu.memory_space<vmem>>, vector<256x128xbf16>
    %cst_8 = arith.constant dense<0.000000e+00> : vector<8x128xf32>
    %10 = tpu.matmul %8, %9, %cst_8 {dimension_numbers = #tpu.dot_dimension_numbers<[1], [0], [0], [1], [0, 0, 1, 1], [], []>} : vector<8x256xbf16>, vector<256x128xbf16>, vector<8x128xf32> -> vector<8x128xf32>
    %c0_9 = arith.constant 0 : index
    %c0_10 = arith.constant 0 : index
    %11 = vector.load %arg5[%c0_9, %c0_10] : memref<1x128xf32, #tpu.memory_space<vmem>>, vector<1x128xf32>
    %12 = vector.broadcast %11 : vector<1x128xf32> to vector<8x128xf32>
    %13 = arith.addf %10, %12 : vector<8x128xf32>
    %cst_11 = arith.constant 0.000000e+00 : f32
    %14 = vector.broadcast %cst_11 : f32 to vector<8x128xf32>
    %15 = arith.maximumf %13, %14 : vector<8x128xf32>
    %16 = arith.truncf %15 : vector<8x128xf32> to vector<8x128xbf16>
    %c0_12 = arith.constant 0 : index
    %c0_13 = arith.constant 0 : index
    %17 = vector.load %arg6[%c0_12, %c0_13] : memref<128x128xbf16, #tpu.memory_space<vmem>>, vector<128x128xbf16>
    %cst_14 = arith.constant dense<0.000000e+00> : vector<8x128xf32>
    %18 = tpu.matmul %16, %17, %cst_14 {dimension_numbers = #tpu.dot_dimension_numbers<[1], [0], [0], [1], [0, 0, 1, 1], [], []>} : vector<8x128xbf16>, vector<128x128xbf16>, vector<8x128xf32> -> vector<8x128xf32>
    %c0_15 = arith.constant 0 : index
    %c0_16 = arith.constant 0 : index
    %19 = vector.load %arg7[%c0_15, %c0_16] : memref<1x128xf32, #tpu.memory_space<vmem>>, vector<1x128xf32>
    %20 = vector.broadcast %19 : vector<1x128xf32> to vector<8x128xf32>
    %21 = arith.addf %18, %20 : vector<8x128xf32>
    %cst_17 = arith.constant 0.000000e+00 : f32
    %22 = vector.broadcast %cst_17 : f32 to vector<8x128xf32>
    %23 = arith.maximumf %21, %22 : vector<8x128xf32>
    %24 = arith.truncf %23 : vector<8x128xf32> to vector<8x128xbf16>
    %c0_18 = arith.constant 0 : index
    %c0_19 = arith.constant 0 : index
    %25 = vector.load %arg8[%c0_18, %c0_19] : memref<128x128xbf16, #tpu.memory_space<vmem>>, vector<128x128xbf16>
    %cst_20 = arith.constant dense<0.000000e+00> : vector<8x128xf32>
    %26 = tpu.matmul %24, %25, %cst_20 {dimension_numbers = #tpu.dot_dimension_numbers<[1], [0], [0], [1], [0, 0, 1, 1], [], []>} : vector<8x128xbf16>, vector<128x128xbf16>, vector<8x128xf32> -> vector<8x128xf32>
    %c0_21 = arith.constant 0 : index
    %c0_22 = arith.constant 0 : index
    %27 = vector.load %arg9[%c0_21, %c0_22] : memref<1x128xf32, #tpu.memory_space<vmem>>, vector<1x128xf32>
    %28 = vector.broadcast %27 : vector<1x128xf32> to vector<8x128xf32>
    %29 = arith.addf %26, %28 : vector<8x128xf32>
    %30 = arith.truncf %29 : vector<8x128xf32> to vector<8x128xbf16>
    %c0_23 = arith.constant 0 : index
    %c0_24 = arith.constant 0 : index
    %31 = vector.load %arg10[%c0_23, %c0_24] : memref<8x128xbf16, #tpu.memory_space<vmem>>, vector<8x128xbf16>
    tpu.vector_store %arg10[%c0_23, %c0_24], %30 {strides = array<i32>} : memref<8x128xbf16, #tpu.memory_space<vmem>>, vector<8x128xbf16>,
    return
  }
  func.func @transform_0(%arg0: i32) -> (i32, i32) {
    %c0_i32 = arith.constant 0 : i32
    %c0_i32_0 = arith.constant 0 : i32
    return %arg0, %c0_i32 : i32, i32
  }
  func.func @transform_1(%arg0: i32) -> (i32, i32) {
    %c0_i32 = arith.constant 0 : i32
    %c0_i32_0 = arith.constant 0 : i32
    %c0_i32_1 = arith.constant 0 : i32
    return %c0_i32, %c0_i32_0 : i32, i32
  }
  func.func @transform_2(%arg0: i32) -> (i32, i32) {
    %c0_i32 = arith.constant 0 : i32
    %c0_i32_0 = arith.constant 0 : i32
    %c0_i32_1 = arith.constant 0 : i32
    return %c0_i32, %c0_i32_0 : i32, i32
  }
  func.func @transform_3(%arg0: i32) -> (i32, i32) {
    %c0_i32 = arith.constant 0 : i32
    %c0_i32_0 = arith.constant 0 : i32
    %c0_i32_1 = arith.constant 0 : i32
    return %c0_i32, %c0_i32_0 : i32, i32
  }
  func.func @transform_4(%arg0: i32) -> (i32, i32) {
    %c0_i32 = arith.constant 0 : i32
    %c0_i32_0 = arith.constant 0 : i32
    %c0_i32_1 = arith.constant 0 : i32
    return %c0_i32, %c0_i32_0 : i32, i32
  }
  func.func @transform_5(%arg0: i32) -> (i32, i32) {
    %c0_i32 = arith.constant 0 : i32
    %c0_i32_0 = arith.constant 0 : i32
    %c0_i32_1 = arith.constant 0 : i32
    return %c0_i32, %c0_i32_0 : i32, i32
  }
  func.func @transform_6(%arg0: i32) -> (i32, i32) {
    %c0_i32 = arith.constant 0 : i32
    %c0_i32_0 = arith.constant 0 : i32
    %c0_i32_1 = arith.constant 0 : i32
    return %c0_i32, %c0_i32_0 : i32, i32
  }
  func.func @transform_7(%arg0: i32) -> (i32, i32) {
    %c0_i32 = arith.constant 0 : i32
    %c0_i32_0 = arith.constant 0 : i32
    %c0_i32_1 = arith.constant 0 : i32
    return %c0_i32, %c0_i32_0 : i32, i32
  }
  func.func @transform_8(%arg0: i32) -> (i32, i32) {
    %c0_i32 = arith.constant 0 : i32
    %c0_i32_0 = arith.constant 0 : i32
    %c0_i32_1 = arith.constant 0 : i32
    return %c0_i32, %c0_i32_0 : i32, i32
  }
  func.func @transform_9(%arg0: i32) -> (i32, i32) {
    %c0_i32 = arith.constant 0 : i32
    %c0_i32_0 = arith.constant 0 : i32
    return %arg0, %c0_i32 : i32, i32
  }
}

</mosaic_0001>

<bundles_post_ra>
// kernel: tpu_custom_call.1
= control target key start
LH: loop header
LB: loop body
LE: loop exit
PB: predicated region body
PF: predicated region fallthrough
CT: control target
= control target key end

     0   :  { %7 = vsyncpa [#allocation3], 0  ;;  %s633_s0 = inlined_call_operand.hbm [shape: f32[16,128], index: 0, kind: input, shape index: {}]   ;;  %s634_s1 = inlined_call_operand.hbm [shape: f32[8,128], index: 1, kind: input, shape index: {}]   ;;  %s635_s2 = inlined_call_operand.hbm [shape: f32[16,128], index: 2, kind: output, shape index: {}]  }
   0x1   :  { %9 = vsyncpa [#allocation3 + $0x1], 0 }
   0x2   :  { %10 = vsyncpa [#allocation6], 0 }
   0x3   :  { %11 = vsyncpa [#allocation4], 0 }
   0x4   :  { %13 = vsyncpa [#allocation4 + $0x1], 0  ;;  %s495_s9 = smov 0   ;;  %s497_s10 = smov 0  }
   0x5   :  { %s499_s11 = smov 0   ;;  %s501_s12 = smov 0  }
   0x6 LB: > { %s516_s13 = sadd.s32 4294967295, %s477_s12   ;;  %s276_s14 = sadd.s32 4294967294, %s477_s12   ;;  %s477_s12 = sphi %s501_s12, %s645_s12   ;;  %s473_s11 = sphi %s499_s11, %s644_s11   ;;  %s469_s10 = sphi %s497_s10, %s643_s10   ;;  %s465_s9 = sphi %s495_s9, %s642_s9  }
   0x7   : > { %p39_p0 = scmp.ne.s32.totalorder %s469_s10, %s465_s9  ;;  %p40_p1 = scmp.eq.s32.totalorder %s516_s13, 0 }
   0x8   : > { %p84_p2 = scmp.eq.s32.totalorder %s516_s13, 1  ;;  %p90_p3 = scmp.eq.s32.totalorder %s276_s14, 1 }
   0x9   : > { %p525_p4 = por %p40_p1, %p39_p0  ;;  %p277_p5 = scmp.ge.s32.totalorder %s477_s12, 1 }
   0xa   : > { %p530_p6 = por %p90_p3, %p39_p0  ;;  %p97_p7 = scmp.lt.s32.totalorder %s477_s12, 3 }
   0xb   : > { %s109_s19 = sshll.u32 %s634_s1, 4  ;;  %s479_s21 = smov [#allocation5]   ;;  %s110_s19 = int_to_ptr.hbm [resolvable:$true] %s109_s19 }
   0xc   : > { %p538_p8 = pnand %p277_p5, %p97_p7  ;;  %s111_s22 = sshll.u32 %s479_s21, 4  ;;  %s112_s22 = int_to_ptr.vmem [resolvable:$true] %s111_s22 }
   0xd   : > { %s548_s23 = sadd.s32 1, %s477_s12   ;;  %s26_s24 = sadd.s32 1, %s473_s11 }
   0xe   : > { %p298_p10 = pneg %p538_p8  ;;  %s23_s25 = ssub.s32 %s477_s12, %s548_s23 }
   0xf   : > { %p24_p12 = scmp.eq.s32.totalorder %s23_s25, 0  ;;  %p33_p13 = scmp.ne.s32.totalorder %s473_s11, %s469_s10 }
  0x10   : > { %p299_p11 = pnand %p298_p10, %p40_p1  ;;  %p34_p0 = scmp.eq.s32.totalorder %s477_s12, 0 }
  0x11   : > { %s557_s26 = scalar_select %p24_p12, %s473_s11, %s26_s24  }
  0x12   : > { %301 = dma.hbm_to_vmem [thread:$0]  (!%p299_p11), %s110_s19, 128, %s112_s22, [#allocation6]  }
  0x13   : > { %p561_p3 = por %p84_p2, %p33_p13  ;;  %p311_p5 = scmp.lt.s32.totalorder %s477_s12, 2 }
  0x14   : > { %s122_s28 = sand.u32 1, %s473_s11   ;;  %s281_s29 = sshll.u32 %s477_s12, 3 }
  0x15   : > { %p35_p7 = por %p34_p0, %p33_p13  ;;  %s280_s30 = sshll.u32 %s122_s28, 3 }
  0x16   : > { %s130_s5 = scalar_lea.hbm %s633_s0, %s281_s29  ;;  %s126_s7 = scalar_lea.vmem [#allocation2], %s280_s30 }
  0x17   : > { %s132_s6 = sshll.u32 %s130_s5, 4  ;;  %s134_s8 = sshll.u32 %s126_s7, 4  ;;  %s133_s6 = int_to_ptr.hbm [resolvable:$true] %s132_s6  ;;  %s135_s8 = int_to_ptr.vmem [resolvable:$true] %s134_s8 }
  0x18   : > { %p571_p10 = pnand %p311_p5, %p35_p7  ;;  %s123_s17 = scalar_lea.sflag [#allocation3], %s122_s28 }
  0x19   : > { %s377_s18 = sshra.s32 %s133_s6, 4  ;;  %s384_s24 = scalar_lea.hbm %s633_s0, 16  ;;  %s378_s18 = int_to_ptr.hbm [resolvable:$true] %s377_s18 }
  0x1a   : > { %s379_s19 = scalar_lea.hbm %s378_s18, 8  ;;  %p381_p11 = pneg %p571_p10 }
  0x1b   : > { %p380_p2 = scmp.ne.s32.totalorder %s378_s18, %s379_s19  ;;  %p385_p0 = scmp.lt.s32.totalorder %s378_s18, %s633_s0 }
  0x1c   : > { %p386_p5 = scmp.lt.s32.totalorder %s384_s24, %s379_s19 }
  0x1d   : > { %p382_p12 = pnand %p381_p11, %p380_p2 }
  0x1e   : > { %p387_p7 = por %p386_p5, %p385_p0 }
  0x1f   : > { %p383_p13 = pneg %p382_p12 }
  0x21   : > { %p388_p9 = pnand %p387_p7, %p383_p13 }
  0x23   : > { %391 = shalt.err (!%p388_p9)
}
  0x24   : > { %305 = dma.hbm_to_vmem [thread:$0]  (!%p571_p10), %s133_s6, 128, %s135_s8, %s123_s17  }
  0x25   : > { %143 = sbr.rel (%p538_p8) target bundleno = 60 (0x3c), region = 28  ;;  %s588_s28 = sand.u32 (!%p538_p8), 1, %s469_s10  }
  0x26   : > { %s283_s30 = sshll.u32 (!%p538_p8), %s588_s28, 3  ;;  %s146_s3 = scalar_lea.sflag (!%p538_p8), [#allocation3], %s588_s28 }
  0x27   : > { %s149_s4 = scalar_lea.vmem (!%p538_p8), [#allocation2], %s283_s30 }
  0x2a   : > { %452 = dma.done.wait (%p525_p4), %s146_s3, 128  }
  0x2b   : > { %454 = vsyncadd (%p525_p4), %s146_s3, 4294967168 }
  0x2c   : > { %456 = dma.done.wait (%p40_p1), [#allocation6], 128  }
  0x2d   : > { %458 = vsyncadd (%p40_p1), [#allocation6], 4294967168  ;;  %s287_s20 = sshll.u32 %s516_s13, 3  ;;  %s175_s8 = scalar_lea.vmem [#allocation7], %s283_s30  ;;  %v176_v0 = vld [vmem:[%s149_s4] sm:$0xff]  ;;  %v177_v1 = vld [vmem:[#allocation5] sm:$0xff] }
  0x2e   : > { %s191_s7 = scalar_lea.hbm %s635_s2, %s287_s20  ;;  %s193_s14 = sshll.u32 %s175_s8, 4  ;;  %v178_v2 = vadd.f32 %v177_v1, %v176_v0  ;;  %s194_s14 = int_to_ptr.vmem [resolvable:$true] %s193_s14 }
  0x2f   : > { %s195_s17 = sshll.u32 %s191_s7, 4  ;;  %s181_s15 = scalar_lea.sflag [#allocation4], %s588_s28  ;;  %s196_s17 = int_to_ptr.hbm [resolvable:$true] %s195_s17 }
  0x30   : > { %179 = vst [vmem:[%s175_s8] sm:$0xff] %v178_v2  ;;  %s421_s18 = sshra.s32 %s196_s17, 4  ;;  %s427_s22 = scalar_lea.hbm %s635_s2, 16  ;;  %s422_s18 = int_to_ptr.hbm [resolvable:$true] %s421_s18 }
  0x31   : > { %s423_s19 = scalar_lea.hbm %s422_s18, 8  ;;  %p428_p9 = scmp.lt.s32.totalorder %s422_s18, %s635_s2 }
  0x32   : > { %p424_p1 = scmp.ne.s32.totalorder %s422_s18, %s423_s19  ;;  %p429_p10 = scmp.lt.s32.totalorder %s427_s22, %s423_s19 }
  0x34   : > { %p425_p4 = pnand %p424_p1, %p561_p3  ;;  %p430_p2 = por %p429_p10, %p428_p9 }
  0x36   : > { %p426_p8 = pneg %p425_p4 }
  0x38   : > { %p431_p11 = pnand %p430_p2, %p426_p8 }
  0x3a   : > { %434 = shalt.err (!%p431_p11)
}
  0x3b   : > { %296 = dma.vmem_to_hbm [thread:$0]  (%p561_p3), %s194_s14, 128, %s196_s17, %s181_s15  }
  0x3c PF: > { %s207_s29 = sand.u32 1, %s465_s9   ;;  %p641_p12 = scmp.ge.s32.totalorder %s477_s12, 2 }
  0x3d   : > { %s208_s28 = scalar_lea.sflag [#allocation4], %s207_s29 }
  0x3e   : > { %p307_p13 = pnand %p641_p12, %p530_p6 }
  0x40   : > { %p308_p0 = pneg %p307_p13 }
  0x42   : > { %460 = dma.done.wait (%p308_p0), %s208_s28, 128  }
  0x43   : > { %462 = vsyncadd (%p308_p0), %s208_s28, 4294967168  ;;  %p16_p5 = scmp.ge.s32.totalorder %s548_s23, 4   ;;  %s642_s9 = smov %s469_s10 }
  0x44   : > { %s643_s10 = smov %s473_s11  ;;  %s644_s11 = smov %s557_s26 }
  0x45   : > { %s645_s12 = smov %s548_s23  ;;  %18 = sbr.rel (!%p16_p5) target bundleno = 6 (0x6), region = 77 }
  0x4a   :  { %214 = vsyncpa [#allocation3], 1 }
  0x4b   :  { %216 = vsyncpa [#allocation3 + $0x1], 1 }
  0x4c   :  { %217 = vsyncpa [#allocation6], 1 }
  0x4d   :  { %218 = vsyncpa [#allocation4], 1 }
  0x4e   :  { %220 = vsyncpa [#allocation4 + $0x1], 1 }

// kernel: _mlp3_impl.1
= control target key start
LH: loop header
LB: loop body
LE: loop exit
PB: predicated region body
PF: predicated region fallthrough
CT: control target
= control target key end

     0   :  { %14 = vsyncpa [#allocation3], 0  ;;  %s1002_s0 = inlined_call_operand.vmem [shape: bf16[8,128], index: 0, kind: input, shape index: {}]   ;;  %s1003_s1 = inlined_call_operand.hbm [shape: bf16[128,256], index: 1, kind: input, shape index: {}]   ;;  %s1004_s2 = inlined_call_operand.vmem [shape: f32[1,256], index: 2, kind: input, shape index: {}]   ;;  %s1005_s3 = inlined_call_operand.hbm [shape: bf16[256,128], index: 3, kind: input, shape index: {}]   ;;  %s1006_s4 = inlined_call_operand.vmem [shape: f32[1,128], index: 4, kind: input, shape index: {}]   ;;  %s1007_s5 = inlined_call_operand.hbm [shape: bf16[128,128], index: 5, kind: input, shape index: {}]   ;;  %s1008_s6 = inlined_call_operand.vmem [shape: f32[1,128], index: 6, kind: input, shape index: {}]   ;;  %s1009_s7 = inlined_call_operand.hbm [shape: bf16[128,128], index: 7, kind: input, shape index: {}]   ;;  %s1010_s8 = inlined_call_operand.vmem [shape: f32[1,128], index: 8, kind: input, shape index: {}]   ;;  %s1011_s9 = inlined_call_operand.vmem [shape: bf16[8,128], index: 9, kind: output, shape index: {}]  }
   0x1   :  { %15 = vsyncpa [#allocation5], 0  ;;  %s38_s11 = sshll.u32 %s1005_s3, 4  ;;  %s39_s11 = int_to_ptr.hbm [resolvable:$true] %s38_s11 }
   0x2   :  { %16 = vsyncpa [#allocation8], 0  ;;  %s914_s12 = smov [#allocation4]   ;;  %s23_s16 = sshll.u32 %s1003_s1, 4  ;;  %s24_s16 = int_to_ptr.hbm [resolvable:$true] %s23_s16 }
   0x3   :  { %s40_s13 = sshll.u32 %s914_s12, 4  ;;  %s915_s17 = smov 64   ;;  %s41_s13 = int_to_ptr.vmem [resolvable:$true] %s40_s13 }
   0x4   :  { %s916_s18 = smov 4   ;;  %s917_s19 = smov [#allocation2]  }
   0x5   :  { %46 = dma.hbm_to_vmem [thread:$0]  %s39_s11, 2048, %s41_s13, [#allocation5], %s915_s17, %s915_s17, %s916_s18  }
   0x6   :  { %s25_s20 = sshll.u32 %s917_s19, 4  ;;  %s918_s21 = smov 128   ;;  %s26_s20 = int_to_ptr.vmem [resolvable:$true] %s25_s20 }
   0x7   :  { %s919_s22 = smov 8   ;;  %s53_s24 = sshll.u32 %s1007_s5, 4  ;;  %s54_s24 = int_to_ptr.hbm [resolvable:$true] %s53_s24 }
   0x8   :  { %31 = dma.hbm_to_vmem [thread:$0]  %s24_s16, 2048, %s26_s20, [#allocation3], %s918_s21, %s918_s21, %s919_s22  }
   0x9   :  { %s920_s25 = smov [#allocation6]   ;;  %s68_s28 = sshll.u32 %s1009_s7, 4  ;;  %s69_s28 = int_to_ptr.hbm [resolvable:$true] %s68_s28 }
   0xa   :  { %s55_s26 = sshll.u32 %s920_s25, 4  ;;  %s921_s29 = smov [#allocation7]   ;;  %s56_s26 = int_to_ptr.vmem [resolvable:$true] %s55_s26 }
   0xb   :  { %61 = dma.hbm_to_vmem [thread:$0]  %s54_s24, 1024, %s56_s26, [#allocation5], %s915_s17, %s915_s17, %s916_s18  }
   0xc   :  { %s70_s30 = sshll.u32 %s921_s29, 4  ;;  %s71_s30 = int_to_ptr.vmem [resolvable:$true] %s70_s30 }
   0xd   :  { %76 = dma.hbm_to_vmem [thread:$0]  %s69_s28, 1024, %s71_s30, [#allocation8], %s915_s17, %s915_s17, %s916_s18  }
   0xe   :  { %908 = dma.done.wait [#allocation3], 2048  }
   0xf   :  { %909 = vsyncadd [#allocation3], 4294965248 }
  0x10   :  { %910 = dma.done.wait [#allocation5], 3072  }
  0x11   :  { %911 = vsyncadd [#allocation5], 4294964224 }
  0x12   :  { %912 = dma.done.wait [#allocation8], 1024  }
  0x13   :  { %913 = vsyncadd [#allocation8], 4294966272  ;;  %v619_v0 = vld [vmem:[#allocation2 + $0x70] sm:$0xf]  ;;  %v768_v1 = vld [vmem:[#allocation2 + $0x74] sm:$0xf0] }
  0x14   :  { %v767_v2 = vld [vmem:[#allocation2 + $0x74] sm:$0xf]  ;;  %v620_v3 = vor.u32 %v768_v1, %v619_v0  ;;  %v621_v4 = vld [vmem:[#allocation2 + $0x78] sm:$0xf0]  ;;  %v611_v5 = vld [vmem:[#allocation2 + $0x60] sm:$0xf] }
  0x15   :  { %v766_v6 = vld [vmem:[#allocation2 + $0x64] sm:$0xf0]  ;;  %v624_v7 = vor.u32 %v767_v2, %v621_v4  ;;  %v765_v8 = vld [vmem:[#allocation2 + $0x64] sm:$0xf]  ;;  %v613_v9 = vld [vmem:[#allocation2 + $0x68] sm:$0xf0] }
  0x16   :  { %198 = vmatpush.bf16.msra.mxu0 %v620_v3  ;;  %v612_v10 = vor.u32 %v766_v6, %v611_v5  ;;  %v616_v11 = vor.u32 %v765_v8, %v613_v9  ;;  %v603_v12 = vld [vmem:[#allocation2 + $0x50] sm:$0xf]  ;;  %v764_v13 = vld [vmem:[#allocation2 + $0x54] sm:$0xf0]  ;;  %v763_v14 = vld [vmem:[#allocation2 + $0x54] sm:$0xf] }
  0x17   :  { %211 = vmatpush.bf16.msra.mxu1 %v624_v7  ;;  %v605_v15 = vld [vmem:[#allocation2 + $0x58] sm:$0xf0]  ;;  %v604_v16 = vor.u32 %v764_v13, %v603_v12  ;;  %v595_v18 = vld [vmem:[#allocation2 + $0x40] sm:$0xf]  ;;  %v762_v19 = vld [vmem:[#allocation2 + $0x44] sm:$0xf0] }
  0x18   :  { %v608_v17 = vor.u32 %v763_v14, %v605_v15  ;;  %v761_v20 = vld [vmem:[#allocation2 + $0x44] sm:$0xf]  ;;  %v597_v21 = vld [vmem:[#allocation2 + $0x48] sm:$0xf0]  ;;  %v596_v22 = vor.u32 %v762_v19, %v595_v18  ;;  %v776_v23 = vld [vmem:[#allocation4 + $0x38] sm:$0xff] }
  0x19   :  { %v784_v24 = vld [vmem:[#allocation4 + $0x78] sm:$0xff]  ;;  %v600_v25 = vor.u32 %v761_v20, %v597_v21  ;;  %v587_v26 = vld [vmem:[#allocation2 + $0x30] sm:$0xf]  ;;  %v759_v28 = vld [vmem:[#allocation2 + $0x34] sm:$0xf]  ;;  %360 = vmatpush.bf16.msra.mxu2 %v776_v23 }
  0x1a   :  { %199 = vmatpush.bf16.msra.mxu0 %v612_v10  ;;  %v760_v27 = vld [vmem:[#allocation2 + $0x34] sm:$0xf0]  ;;  %v589_v29 = vld [vmem:[#allocation2 + $0x38] sm:$0xf0]  ;;  %373 = vmatpush.bf16.msra.mxu3 %v784_v24  ;;  %v775_v30 = vld [vmem:[#allocation4 + $0x30] sm:$0xff] }
  0x1b   :  { %212 = vmatpush.bf16.msra.mxu1 %v616_v11  ;;  %v783_v31 = vld [vmem:[#allocation4 + $0x70] sm:$0xff]  ;;  %v588_v32 = vor.u32 %v760_v27, %v587_v26  ;;  %v579_v33 = vld [vmem:[#allocation2 + $0x20] sm:$0xf]  ;;  %v592_v34 = vor.u32 %v759_v28, %v589_v29  ;;  %v758_v35 = vld [vmem:[#allocation2 + $0x24] sm:$0xf0] }
  0x1c   :  { %v757_v36 = vld [vmem:[#allocation2 + $0x24] sm:$0xf]  ;;  %v581_v37 = vld [vmem:[#allocation2 + $0x28] sm:$0xf0]  ;;  %v580_v40 = vor.u32 %v758_v35, %v579_v33  ;;  %v571_v42 = vld [vmem:[#allocation2 + $0x10] sm:$0xf] }
  0x1d   :  { %361 = vmatpush.bf16.msra.mxu2 %v775_v30  ;;  %v774_v38 = vld [vmem:[#allocation4 + $0x28] sm:$0xff]  ;;  %v584_v41 = vor.u32 %v757_v36, %v581_v37  ;;  %v756_v43 = vld [vmem:[#allocation2 + $0x14] sm:$0xf0]  ;;  %v755_v44 = vld [vmem:[#allocation2 + $0x14] sm:$0xf] }
  0x1e   :  { %200 = vmatpush.bf16.msra.mxu0 %v604_v16  ;;  %374 = vmatpush.bf16.msra.mxu3 %v783_v31  ;;  %v782_v39 = vld [vmem:[#allocation4 + $0x68] sm:$0xff]  ;;  %v573_v45 = vld [vmem:[#allocation2 + $0x18] sm:$0xf0]  ;;  %v773_v46 = vld [vmem:[#allocation4 + $0x20] sm:$0xff]  ;;  %v572_v48 = vor.u32 %v756_v43, %v571_v42 }
  0x1f   :  { %213 = vmatpush.bf16.msra.mxu1 %v608_v17  ;;  %v781_v47 = vld [vmem:[#allocation4 + $0x60] sm:$0xff]  ;;  %v576_v49 = vor.u32 %v755_v44, %v573_v45  ;;  %v754_v51 = vld [vmem:[#allocation2 + $0x4] sm:$0xf0]  ;;  %v565_v53 = vld [vmem:[#allocation2 + $0x8] sm:$0xf0] }
  0x20   :  { %v563_v50 = vld [vmem:[#allocation2] sm:$0xf]  ;;  %v753_v52 = vld [vmem:[#allocation2 + $0x4] sm:$0xf]  ;;  %v772_v54 = vld [vmem:[#allocation4 + $0x18] sm:$0xff] }
  0x21   :  { %362 = vmatpush.bf16.msra.mxu2 %v774_v38  ;;  %v780_v55 = vld [vmem:[#allocation4 + $0x58] sm:$0xff]  ;;  %v564_v56 = vor.u32 %v754_v51, %v563_v50  ;;  %v568_v57 = vor.u32 %v753_v52, %v565_v53  ;;  %v771_v58 = vld [vmem:[#allocation4 + $0x10] sm:$0xff]  ;;  %v95_v60 = vld [vmem:[%s1002_s0] sm:$0xf] }
  0x22   :  { %201 = vmatpush.bf16.msra.mxu0 %v596_v22  ;;  %375 = vmatpush.bf16.msra.mxu3 %v782_v39  ;;  %v779_v59 = vld [vmem:[#allocation4 + $0x50] sm:$0xff]  ;;  %v770_v61 = vld [vmem:[#allocation4 + $0x8] sm:$0xff]  ;;  %v769_v63 = vld [vmem:[#allocation4] sm:$0xff] }
  0x23   :  { %214 = vmatpush.bf16.msra.mxu1 %v600_v25  ;;  %v778_v62 = vld [vmem:[#allocation4 + $0x48] sm:$0xff]  ;;  %v777_v0 = vld [vmem:[#allocation4 + $0x40] sm:$0xff]  ;;  %v792_v1 = vld [vmem:[#allocation6 + $0x38] sm:$0xff] }
  0x24   :  { %v791_v2 = vld [vmem:[#allocation6 + $0x30] sm:$0xff]  ;;  %v790_v3 = vld [vmem:[#allocation6 + $0x28] sm:$0xff]  ;;  %v789_v4 = vld [vmem:[#allocation6 + $0x20] sm:$0xff] }
  0x25   :  { %363 = vmatpush.bf16.msra.mxu2 %v773_v46  ;;  %v788_v5 = vld [vmem:[#allocation6 + $0x18] sm:$0xff]  ;;  %v112_v6 = vld [vmem:[%s1004_s2] sm:$0x3]  ;;  %v787_v7 = vld [vmem:[#allocation6 + $0x10] sm:$0xff] }
  0x26   :  { %202 = vmatpush.bf16.msra.mxu0 %v588_v32  ;;  %376 = vmatpush.bf16.msra.mxu3 %v781_v47  ;;  %v114_v8 = vperm.slane %v112_v6, 0  ;;  %v115_v9 = vperm.slane %v112_v6, 1  ;;  %v786_v20 = vld [vmem:[#allocation6 + $0x8] sm:$0xff]  ;;  %v785_v21 = vld [vmem:[#allocation6] sm:$0xff]  ;;  %v800_v22 = vld [vmem:[#allocation7 + $0x38] sm:$0xff] }
  0x27   :  { %215 = vmatpush.bf16.msra.mxu1 %v592_v34  ;;  %v799_v23 = vld [vmem:[#allocation7 + $0x30] sm:$0xff]  ;;  %v798_v24 = vld [vmem:[#allocation7 + $0x28] sm:$0xff]  ;;  %v797_v25 = vld [vmem:[#allocation7 + $0x20] sm:$0xff] }
  0x28   :  { %v796_v26 = vld [vmem:[#allocation7 + $0x18] sm:$0xff]  ;;  %v795_v27 = vld [vmem:[#allocation7 + $0x10] sm:$0xff]  ;;  %v809_v28 = vld [vmem:[%s1006_s4] ss:$0 sm:$0xff] }
  0x29   :  { %364 = vmatpush.bf16.msra.mxu2 %v772_v54  ;;  %v794_v37 = vld [vmem:[#allocation7 + $0x8] sm:$0xff]  ;;  %v793_v38 = vld [vmem:[#allocation7] sm:$0xff] }
  0x2a   :  { %203 = vmatpush.bf16.msra.mxu0 %v580_v40  ;;  %377 = vmatpush.bf16.msra.mxu3 %v780_v55  ;;  %v810_v39 = vld [vmem:[%s1008_s6] ss:$0 sm:$0xff] }
  0x2b   :  { %216 = vmatpush.bf16.msra.mxu1 %v584_v41  ;;  %v811_v45 = vld [vmem:[%s1010_s8] ss:$0 sm:$0xff] }
  0x2d   :  { %365 = vmatpush.bf16.msra.mxu2 %v771_v58 }
  0x2e   :  { %204 = vmatpush.bf16.msra.mxu0 %v572_v48  ;;  %378 = vmatpush.bf16.msra.mxu3 %v779_v59 }
  0x2f   :  { %217 = vmatpush.bf16.msra.mxu1 %v576_v49 }
  0x31   :  { %366 = vmatpush.bf16.msra.mxu2 %v770_v61 }
  0x32   :  { %205 = vmatpush.bf16.msra.mxu0 %v564_v56  ;;  %379 = vmatpush.bf16.msra.mxu3 %v778_v62 }
  0x33   :  { %218 = vmatpush.bf16.msra.mxu1 %v568_v57 }
  0x35   :  { %206 = vmatmul.bf16.vlgmr.msra.gmra.mxu0 %v95_v60  ;;  %367 = vmatpush.bf16.msra.mxu2 %v769_v63 }
  0x36   :  { %219 = vmatmul.bf16.vlgmr.msra.gmra.mxu1 %v95_v60  ;;  %380 = vmatpush.bf16.msra.mxu3 %v777_v0 }
  0x37   :  { %456 = vmatpush.bf16.msrb.mxu0 %v792_v1  ;;  %539 = vmatpush.bf16.msrb.mxu1 %v800_v22 }
  0x3b   :  { %457 = vmatpush.bf16.msrb.mxu0 %v791_v2  ;;  %540 = vmatpush.bf16.msrb.mxu1 %v799_v23 }
  0x3f   :  { %458 = vmatpush.bf16.msrb.mxu0 %v790_v3  ;;  %541 = vmatpush.bf16.msrb.mxu1 %v798_v24 }
  0x43   :  { %459 = vmatpush.bf16.msrb.mxu0 %v789_v4  ;;  %542 = vmatpush.bf16.msrb.mxu1 %v797_v25 }
  0x47   :  { %460 = vmatpush.bf16.msrb.mxu0 %v788_v5  ;;  %543 = vmatpush.bf16.msrb.mxu1 %v796_v26 }
  0x4b   :  { %461 = vmatpush.bf16.msrb.mxu0 %v787_v7  ;;  %544 = vmatpush.bf16.msrb.mxu1 %v795_v27 }
  0x4f   :  { %462 = vmatpush.bf16.msrb.mxu0 %v786_v20  ;;  %545 = vmatpush.bf16.msrb.mxu1 %v794_v37 }
  0x53   :  { %463 = vmatpush.bf16.msrb.mxu0 %v785_v21  ;;  %546 = vmatpush.bf16.msrb.mxu1 %v793_v38 }
  0xb2   :  { %v207_v10 = vpop.f32.mrf.mxu0 }
  0xb3   :  { %v208_v11 = vadd.f32 %v207_v10, %v114_v8  ;;  %v220_v12 = vpop.f32.mrf.mxu1 }
  0xb4   :  { %v221_v13 = vadd.f32 %v220_v12, %v115_v9 }
  0xb5   :  { %v224_v14 = vmax.f32 %v208_v11, 0.0 }
  0xb6   :  { %v225_v15 = vmax.f32 %v221_v13, 0.0 }
  0xb7   :  { %v226_v16 = vpack.c.bf16 %v224_v14, %v224_v14 }
  0xb8   :  { %v227_v17 = vpack.c.bf16 %v225_v15, %v225_v15 }
  0xb9   :  { %368 = vmatmul.bf16.vlgmr.msra.gmra.mxu2 %v226_v16 }
  0xba   :  { %381 = vmatmul.bf16.vlgmr.msra.gmra.mxu3 %v227_v17  ;;  %v209_v18 = vpop.f32.mrf.mxu0 }
  0xbb   :  { %v222_v19 = vpop.f32.mrf.mxu1 }
 0x13c   :  { %v369_v29 = vpop.f32.mrf.mxu2 }
 0x13d   :  { %v370_v30 = vadd.f32 %v809_v28, %v369_v29  ;;  %v382_v31 = vpop.f32.mrf.mxu3 }
 0x13f   :  { %v383_v32 = vadd.f32 %v382_v31, %v370_v30 }
 0x141   :  { %v386_v33 = vmax.f32 %v383_v32, 0.0 }
 0x143   :  { %v387_v34 = vpack.c.bf16 %v386_v33, %v386_v33 }
 0x144   :  { %v371_v35 = vpop.f32.mrf.mxu2 }
 0x145   :  { %v384_v36 = vpop.f32.mrf.mxu3  ;;  %464 = vmatmul.bf16.vlgmr.msrb.gmra.mxu0 %v387_v34 }
 0x1c2   :  { %v465_v40 = vpop.f32.mrf.mxu0 }
 0x1c3   :  { %v466_v41 = vadd.f32 %v810_v39, %v465_v40 }
 0x1c5   :  { %v469_v42 = vmax.f32 %v466_v41, 0.0 }
 0x1c7   :  { %v470_v43 = vpack.c.bf16 %v469_v42, %v469_v42 }
 0x1c9   :  { %547 = vmatmul.bf16.vlgmr.msrb.gmra.mxu1 %v470_v43 }
 0x1ca   :  { %v467_v44 = vpop.f32.mrf.mxu0 }
 0x246   :  { %v548_v46 = vpop.f32.mrf.mxu1 }
 0x247   :  { %v549_v47 = vadd.f32 %v811_v45, %v548_v46 }
 0x249   :  { %v552_v48 = vpack.c.bf16 %v549_v47, %v549_v47 }
 0x24b   :  { %553 = vst [vmem:[%s1011_s9] sm:$0xf] %v552_v48 }
 0x24e   :  { %v550_v49 = vpop.f32.mrf.mxu1 }
 0x24f   :  { %558 = vsyncpa [#allocation3], 1 }
 0x250   :  { %559 = vsyncpa [#allocation5], 1 }
 0x251   :  { %560 = vsyncpa [#allocation8], 1 }

</bundles_post_ra>
